<compile_context>
chip_gen: v7x
topology: tpu7x:2x2x1
jax: 0.10.0
libtpu: 0.0.40
codegen_flags: <defaults>
</compile_context>

<pallas_src>
import jax
import jax.numpy as jnp
from jax import lax
from jax.experimental import pallas as pl
from jax.experimental.pallas import tpu as pltpu


def _round_up(v, m):
    return ((v + m - 1) // m) * m


def _cdiv(a, b):
    return (a + b - 1) // b


def _param_rows(input_size):
    # 8-sublane-aligned row offsets inside the packed parameter block.
    r_b1 = _round_up(max(input_size, 1), 8)
    r_w2 = r_b1 + 8
    r_b2 = r_w2 + 8
    total = r_b2 + 8
    return r_b1, r_w2, r_b2, total


def pack_params(w1, b1, w2, b2):
    """Pack (W1, b1, w2, b2) into ONE (R, H) f32 array (called once at init).

    Rows [0, D): W1 stored as (in, out)  (= PyTorch fc1.weight.T)
    Row r_b1   : b1
    Row r_w2   : fc2 weight row
    Row r_b2   : b2 broadcast across H (value read from column 0)
    All non-W1 rows start on 8-sublane boundaries (single aligned loads in-kernel).
    """
    D, H = w1.shape
    r_b1, r_w2, r_b2, total = _param_rows(D)
    p = jnp.zeros((total, H), jnp.float32)
    p = p.at[0:D, :].set(w1.astype(jnp.float32))
    p = p.at[r_b1, :].set(b1.reshape(H).astype(jnp.float32))
    p = p.at[r_w2, :].set(w2.reshape(H).astype(jnp.float32))
    p = p.at[r_b2, :].set(jnp.full((H,), b2.reshape(()), jnp.float32))
    return p


def net_kernel(x_ref, p_ref, o_ref):
    # x_ref: (tb, D) float; p_ref: (R, H) packed params; o_ref: (1, tb) f32
    _, D = x_ref.shape
    r_b1, r_w2, r_b2, _ = _param_rows(D)

    w1 = p_ref[0:D, :]                    # (D, H)
    b1 = p_ref[r_b1:r_b1 + 1, :]          # (1, H)  8-sublane aligned
    w2 = p_ref[r_w2:r_w2 + 1, :]          # (1, H)  fc2 weight row
    b2 = p_ref[r_b2:r_b2 + 1, 0:1]        # (1, 1)

    x = x_ref[...].astype(jnp.float32)    # bf16 streaming supported; cheap VPU cast

    # hidden = relu(x @ W1 + b1)  -- MXU matmul, f32 accumulate
    h = jnp.dot(x, w1, preferred_element_type=jnp.float32) + b1
    h = jnp.maximum(h, 0.0)

    # output = relu(w2 . h + b2), computed as (1, H) x (tb, H)^T -> (1, tb):
    # trans-B MXU contraction (same dimension_numbers as attention q.k^T), so the
    # result comes out lane-dense and the (1, tb) store is a wide vector store.
    out = lax.dot_general(w2, h, dimension_numbers=(((1,), (1,)), ((), ())),
                          preferred_element_type=jnp.float32)        # (1, tb)
    out = jnp.maximum(out + b2, 0.0)
    o_ref[...] = out.astype(o_ref.dtype)


def _pick_tb(B, cap=8192):
    if B <= 1024:
        return B          # single block; block dims == array dims, always legal
    # Large batch: target ~8 grid steps (v7x megacore split + DMA pipelining),
    # lane-aligned tile (multiple of 128 so the (1, tb) out block is unmasked).
    tb = min(cap, max(128, _round_up(_cdiv(B, 8), 128)))
    return min(tb, B)


def net_forward(x, packed_params, *, tb=None):
    """x: (B, D) f32/bf16; packed_params: from pack_params() -> (B, 1) f32."""
    B, D = x.shape
    R, H = packed_params.shape

    if tb is None:
        tb = _pick_tb(B)
    else:
        tb = min(int(tb), B)
        if tb < B:                        # lane-dense out block needs 128-multiples
            tb = _round_up(tb, 128)
            tb = B if tb >= B else tb
    grid_n = _cdiv(B, tb)                 # ragged last block handled by Pallas

    out = pl.pallas_call(
        net_kernel,
        out_shape=jax.ShapeDtypeStruct((1, B), jnp.float32),
        grid_spec=pltpu.PrefetchScalarGridSpec(
            num_scalar_prefetch=0,
            grid=(grid_n,),
            in_specs=[
                # batch tiles stream (no wrapper-side padding of x)
                pl.BlockSpec((tb, D), lambda i: (i, 0)),
                # packed params stay VMEM-resident (constant block index)
                pl.BlockSpec((R, H), lambda i: (0, 0)),
            ],
            out_specs=pl.BlockSpec((1, tb), lambda i: (0, i)),
        ),
        compiler_params=pltpu.CompilerParams(
            dimension_semantics=("parallel",),       # shard batch across TCs (v7x)
            vmem_limit_bytes=48 * 1024 * 1024,       # headroom for large tiles
        ),
    )(x, packed_params)
    return out.reshape(B, 1)               # (1, B) -> (B, 1): free bitcast


def init_params(key, input_size, hidden_size):
    # Deterministic synthetic init (mimics PyTorch's uniform(-1/sqrt(fan_in), +)).
    k1, k2, k3, k4 = jax.random.split(key, 4)
    bound1 = 1.0 / jnp.sqrt(jnp.float32(input_size))
    bound2 = 1.0 / jnp.sqrt(jnp.float32(hidden_size))
    w1 = jax.random.uniform(k1, (input_size, hidden_size), jnp.float32, -bound1, bound1)
    b1 = jax.random.uniform(k2, (1, hidden_size), jnp.float32, -bound1, bound1)
    w2 = jax.random.uniform(k3, (hidden_size, 1), jnp.float32, -bound2, bound2)
    b2 = jax.random.uniform(k4, (1, 1), jnp.float32, -bound2, bound2)
    return w1, b1, w2, b2


def _reference(x, w1, b1, w2, b2):
    h = jnp.maximum(x.astype(jnp.float32) @ w1 + b1, 0.0)
    return jnp.maximum(h @ w2 + b2, 0.0)


if __name__ == "__main__":
    input_size = 16    # feature columns after `x = data_final[:, :-1]`
    hidden_size = 20   # as in the PyTorch script

    key = jax.random.PRNGKey(0)
    kp, k1, k2 = jax.random.split(key, 3)
    w1, b1, w2, b2 = init_params(kp, input_size, hidden_size)
    params = pack_params(w1, b1, w2, b2)   # packed ONCE, hoisted out of the forward

    # Case 1: the 70-row "training" batch from the PyTorch script (single block).
    x_train = jax.random.normal(k1, (70, input_size), jnp.float32)
    out_train = jax.block_until_ready(net_forward(x_train, params))
    assert out_train.shape == (70, 1)
    assert jnp.allclose(out_train, _reference(x_train, w1, b1, w2, b2),
                        atol=1e-5, rtol=1e-5)

    # Case 2: multi-step grid with a ragged last block (300 rows, tb=128, no pad).
    x_med = jax.random.normal(k2, (300, input_size), jnp.float32)
    out_med = jax.block_until_ready(net_forward(x_med, params, tb=128))
    assert out_med.shape == (300, 1)
    assert jnp.allclose(out_med, _reference(x_med, w1, b1, w2, b2),
                        atol=1e-5, rtol=1e-5)

    # Case 3: bf16-streamed x (halves HBM traffic for the only B-scaled operand);
    # the reference consumes the same bf16-rounded x, compute stays f32 in-kernel.
    x_bf16 = x_med.astype(jnp.bfloat16)
    out_bf16 = jax.block_until_ready(net_forward(x_bf16, params, tb=128))
    assert out_bf16.shape == (300, 1)
    assert jnp.allclose(out_bf16,
                        _reference(x_bf16.astype(jnp.float32), w1, b1, w2, b2),
                        atol=1e-4, rtol=1e-4)

    print("KERNEL_OK")
</pallas_src>

<mosaic_0001>
module attributes {stable_mosaic.version = 11 : i64} {
  func.func @net_kernel(%arg0: i32, %arg1: memref<70x16xf32, #tpu.memory_space<vmem>>, %arg2: memref<40x20xf32, #tpu.memory_space<vmem>>, %arg3: memref<1x70xf32, #tpu.memory_space<vmem>>) attributes {dimension_semantics = [#tpu.dimension_semantics<parallel>], iteration_bounds = array<i64: 1>, scalar_prefetch = 0 : i64, scratch_operands = 0 : i64, tpu.core_type = #tpu.core_type<tc>, window_params = [{transform_indices = @transform_0, window_bounds = array<i64: 70, 16>}, {pipeline_mode = #tpu.pipeline_mode<synchronous>, transform_indices = @transform_1, window_bounds = array<i64: 40, 20>}, {transform_indices = @transform_2, window_bounds = array<i64: 1, 70>}]} {
    %c0 = arith.constant 0 : index
    %c0_0 = arith.constant 0 : index
    %0 = vector.load %arg2[%c0, %c0_0] : memref<40x20xf32, #tpu.memory_space<vmem>>, vector<16x20xf32>
    %c16 = arith.constant 16 : index
    %c0_1 = arith.constant 0 : index
    %1 = vector.load %arg2[%c16, %c0_1] : memref<40x20xf32, #tpu.memory_space<vmem>>, vector<1x20xf32>
    %c24 = arith.constant 24 : index
    %c0_2 = arith.constant 0 : index
    %2 = vector.load %arg2[%c24, %c0_2] : memref<40x20xf32, #tpu.memory_space<vmem>>, vector<1x20xf32>
    %c32 = arith.constant 32 : index
    %c0_3 = arith.constant 0 : index
    %3 = vector.load %arg2[%c32, %c0_3] : memref<40x20xf32, #tpu.memory_space<vmem>>, vector<1x1xf32>
    %c0_4 = arith.constant 0 : index
    %c0_5 = arith.constant 0 : index
    %4 = vector.load %arg1[%c0_4, %c0_5] : memref<70x16xf32, #tpu.memory_space<vmem>>, vector<70x16xf32>
    %cst = arith.constant dense<0.000000e+00> : vector<70x20xf32>
    %5 = tpu.matmul %4, %0, %cst {dimension_numbers = #tpu.dot_dimension_numbers<[1], [0], [0], [1], [0, 0, 1, 1], [], []>} : vector<70x16xf32>, vector<16x20xf32>, vector<70x20xf32> -> vector<70x20xf32>
    %6 = vector.broadcast %1 : vector<1x20xf32> to vector<70x20xf32>
    %7 = arith.addf %5, %6 : vector<70x20xf32>
    %cst_6 = arith.constant 0.000000e+00 : f32
    %8 = vector.broadcast %cst_6 : f32 to vector<70x20xf32>
    %9 = arith.maximumf %7, %8 : vector<70x20xf32>
    %cst_7 = arith.constant dense<0.000000e+00> : vector<1x70xf32>
    %10 = tpu.matmul %2, %9, %cst_7 {dimension_numbers = #tpu.dot_dimension_numbers<[1], [1], [0], [0], [0, 0, 1, 0], [], []>} : vector<1x20xf32>, vector<70x20xf32>, vector<1x70xf32> -> vector<1x70xf32>
    %11 = vector.broadcast %3 : vector<1x1xf32> to vector<1x70xf32>
    %12 = arith.addf %10, %11 : vector<1x70xf32>
    %cst_8 = arith.constant 0.000000e+00 : f32
    %13 = vector.broadcast %cst_8 : f32 to vector<1x70xf32>
    %14 = arith.maximumf %12, %13 : vector<1x70xf32>
    %c0_9 = arith.constant 0 : index
    %c0_10 = arith.constant 0 : index
    %15 = vector.load %arg3[%c0_9, %c0_10] : memref<1x70xf32, #tpu.memory_space<vmem>>, vector<1x70xf32>
    tpu.vector_store %arg3[%c0_9, %c0_10], %14 {strides = array<i32>} : memref<1x70xf32, #tpu.memory_space<vmem>>, vector<1x70xf32>,
    return
  }
  func.func @transform_0(%arg0: i32) -> (i32, i32) {
    %c0_i32 = arith.constant 0 : i32
    %c0_i32_0 = arith.constant 0 : i32
    return %arg0, %c0_i32 : i32, i32
  }
  func.func @transform_1(%arg0: i32) -> (i32, i32) {
    %c0_i32 = arith.constant 0 : i32
    %c0_i32_0 = arith.constant 0 : i32
    %c0_i32_1 = arith.constant 0 : i32
    return %c0_i32, %c0_i32_0 : i32, i32
  }
  func.func @transform_2(%arg0: i32) -> (i32, i32) {
    %c0_i32 = arith.constant 0 : i32
    %c0_i32_0 = arith.constant 0 : i32
    return %c0_i32, %arg0 : i32, i32
  }
}

</mosaic_0001>

<bundles_post_ra>
// kernel: tpu_custom_call.1
= control target key start
LH: loop header
LB: loop body
LE: loop exit
PB: predicated region body
PF: predicated region fallthrough
CT: control target
= control target key end

     0   :  { %v442_v2 = vmov 0.0|0.0   ;;  %vm443_vm0 = vmmov 0   ;;  %v444_v4 = vmov 0.0   ;;  %vm30_vm1 = vcmask 130048   ;;  %s567_s0 = inlined_call_operand.vmem [shape: f32[70,16], index: 0, kind: input, shape index: {}]   ;;  %s568_s1 = inlined_call_operand.vmem [shape: f32[40,20], index: 1, kind: input, shape index: {}]   ;;  %s569_s2 = inlined_call_operand.hbm [shape: f32[1,70], index: 2, kind: output, shape index: {}]  }
   0x1   :  { %v12_v0 = vld [vmem:[%s568_s1] sm:$0xff]  ;;  %v13_v1 = vld [vmem:[%s568_s1 + $0x8] sm:$0xff]  ;;  %393 = vmatprep.subr.bf16.mxu0 %v442_v2  ;;  %345 = vmatprep.mubr.msk.f32.mxu0 %vm443_vm0, %v444_v4 }
   0x2   :  { %v394_v3 = vpack.c.bf16 %v13_v1, %v12_v0  ;;  %396 = vmatprep.subr.bf16.mxu1 %v442_v2  ;;  %390 = vmatprep.mubr.msk.f32.mxu1 %vm443_vm0, %v444_v4  ;;  %v17_v5 = vld [vmem:[%s567_s0] sm:$0xff] }
   0x4   :  { %395 = vmatpush3.bf16.msra.mxu0 %v394_v3 }
   0x5   :  { %7 = vsyncpa [#allocation3], 0  ;;  %v18_v6 = vld [vmem:[%s567_s0 + $0x8] sm:$0xff]  ;;  %v19_v7 = vld [vmem:[%s567_s0 + $0x10] sm:$0xff]  ;;  %v445_v15 = vmov 0   ;;  %vm182_vm2 = vcmask 162816  }
   0x6   :  { %v20_v8 = vld [vmem:[%s567_s0 + $0x18] sm:$0xff]  ;;  %v21_v9 = vld [vmem:[%s567_s0 + $0x20] sm:$0xff]  ;;  %v22_v10 = vld [vmem:[%s567_s0 + $0x28] sm:$0xff]  ;;  %417 = vset.pattern.permute.xlu0 %v445_v15  ;;  %s446_s8 = smov [#allocation2]   ;;  %vm284_vm4 = vcmask 565248  }
   0x7   :  { %346 = vmatmul.mubr.msk.f32.vlgmr.msra.gmra.mrb[0].mxu0 %vm30_vm1, %v17_v5  ;;  %v23_v11 = vld [vmem:[%s567_s0 + $0x30] sm:$0xff]  ;;  %v24_v12 = vld [vmem:[%s567_s0 + $0x38] sm:$0xff]  ;;  %v25_v13 = vld [vmem:[%s567_s0 + $0x40] sm:$0x3f]  ;;  %s292_s9 = sshll.u32 %s446_s8, 4  ;;  %s293_s9 = int_to_ptr.vmem [resolvable:$true] %s292_s9 }
   0x8   :  { %348 = vmatprep.mubr.msk.f32.mxu0 %vm443_vm0, %v444_v4  ;;  %v16_v14 = vld [vmem:[%s568_s1 + $0x20] sm:$0x1]  ;;  %v300_v16 = vld [vmem:[%s568_s1 + $0x10] ss:$0 sm:$0xff]  ;;  %vm534_vm3 = vmpackc.low %vm182_vm2, %vm182_vm2  ;;  %s418_s10 = scalar_lea.vmem %s293_s9, 16  ;;  %s422_s11 = scalar_lea.vmem %s293_s9, 32 }
   0x9   :  { %179 = vperm.xlu0 %417, %v16_v14   ;;  %v15_v58 = vld [vmem:[%s568_s1 + $0x18] sm:$0x1]  ;;  %p419_p0 = scmp.ne.s32.totalorder %s293_s9, %s418_s10  ;;  %p423_p1 = scmp.lt.s32.totalorder %s293_s9, %s293_s9 }
   0xa   :  { %p424_p2 = scmp.lt.s32.totalorder %s422_s11, %s418_s10 }
   0xb   :  { %349 = vmatmul.mubr.msk.f32.gmra.mrb[2].mxu0 %vm30_vm1, %v18_v6 }
   0xc   :  { %351 = vmatprep.mubr.msk.f32.mxu0 %vm443_vm0, %v444_v4  ;;  %p425_p3 = por %p424_p2, %p423_p1 }
   0xe   :  { %p426_p4 = pnand %p425_p3, %p419_p0 }
   0xf   :  { %352 = vmatmul.mubr.msk.f32.gmra.mrb[4].mxu0 %vm30_vm1, %v19_v7 }
  0x10   :  { %354 = vmatprep.mubr.msk.f32.mxu0 %vm443_vm0, %v444_v4 }
  0x13   :  { %355 = vmatmul.mubr.msk.f32.gmra.mrb[6].mxu0 %vm30_vm1, %v20_v8 }
  0x14   :  { %357 = vmatprep.mubr.msk.f32.mxu0 %vm443_vm0, %v444_v4 }
  0x17   :  { %358 = vmatmul.mubr.msk.f32.gmra.mrb[8].mxu0 %vm30_vm1, %v21_v9 }
  0x18   :  { %360 = vmatprep.mubr.msk.f32.mxu0 %vm443_vm0, %v444_v4 }
  0x1b   :  { %361 = vmatmul.mubr.msk.f32.gmra.mrb[10].mxu0 %vm30_vm1, %v22_v10 }
  0x1c   :  { %363 = vmatprep.mubr.msk.f32.mxu0 %vm443_vm0, %v444_v4 }
  0x1f   :  { %364 = vmatmul.mubr.msk.f32.gmra.mrb[12].mxu0 %vm30_vm1, %v23_v11 }
  0x20   :  { %366 = vmatprep.mubr.msk.f32.mxu0 %vm443_vm0, %v444_v4 }
  0x23   :  { %367 = vmatmul.mubr.msk.f32.gmra.mrb[14].mxu0 %vm30_vm1, %v24_v12 }
  0x24   :  { %369 = vmatprep.mubr.msk.f32.mxu0 %vm443_vm0, %v444_v4 }
  0x27   :  { %370 = vmatmul.mubr.msk.f32.gmra.mrb[16].mxu0 %vm30_vm1, %v25_v13 }
  0x88   :  { %v180_v59 = vpop.permute.xlu0 %179 }
  0xda   :  { %v124_v17 = vpop.f32.mrb[0].mxu0 }
  0xdb   :  { %v347_v18 = vpop.f32.mrb[1].mxu0  ;;  %v125_v19 = vadd.f32 %v300_v16, %v124_v17 }
  0xdd   :  { %v168_v23 = vmax.f32 %v125_v19, 0.0 }
  0xde   :  { %v129_v20 = vpop.f32.mrb[2].mxu0 }
  0xdf   :  { %v130_v21 = vadd.f32 %v300_v16, %v129_v20  ;;  %v350_v22 = vpop.f32.mrb[3].mxu0 }
  0xe1   :  { %v169_v24 = vmax.f32 %v130_v21, 0.0 }
  0xe2   :  { %v134_v25 = vpop.f32.mrb[4].mxu0 }
  0xe3   :  { %v397_v27 = vpack.c.bf16 %v169_v24, %v168_v23  ;;  %v353_v28 = vpop.f32.mrb[5].mxu0  ;;  %v135_v29 = vadd.f32 %v300_v16, %v134_v25 }
  0xe5   :  { %399 = vmatpush3.bf16.xpose.msk.msra.mxu1 %vm534_vm3, %v397_v27  ;;  %v170_v33 = vmax.f32 %v135_v29, 0.0 }
  0xe6   :  { %v139_v30 = vpop.f32.mrb[6].mxu0  ;;  %400 = vmatprep.subr.bf16.mxu1 %v442_v2 }
  0xe7   :  { %v140_v31 = vadd.f32 %v300_v16, %v139_v30  ;;  %v356_v32 = vpop.f32.mrb[7].mxu0 }
  0xe9   :  { %v171_v34 = vmax.f32 %v140_v31, 0.0 }
  0xea   :  { %v144_v35 = vpop.f32.mrb[8].mxu0 }
  0xeb   :  { %v401_v36 = vpack.c.bf16 %v171_v34, %v170_v33  ;;  %v359_v37 = vpop.f32.mrb[9].mxu0  ;;  %v145_v38 = vadd.f32 %v300_v16, %v144_v35 }
  0xed   :  { %403 = vmatpush3.bf16.xpose.msk.msra.mxu1 %vm534_vm3, %v401_v36  ;;  %v172_v42 = vmax.f32 %v145_v38, 0.0 }
  0xee   :  { %v149_v39 = vpop.f32.mrb[10].mxu0  ;;  %404 = vmatprep.subr.bf16.mxu1 %v442_v2 }
  0xef   :  { %v150_v40 = vadd.f32 %v300_v16, %v149_v39  ;;  %v362_v41 = vpop.f32.mrb[11].mxu0 }
  0xf1   :  { %v173_v43 = vmax.f32 %v150_v40, 0.0 }
  0xf2   :  { %v154_v44 = vpop.f32.mrb[12].mxu0 }
  0xf3   :  { %v405_v45 = vpack.c.bf16 %v173_v43, %v172_v42  ;;  %v365_v46 = vpop.f32.mrb[13].mxu0  ;;  %v155_v47 = vadd.f32 %v300_v16, %v154_v44 }
  0xf5   :  { %407 = vmatpush3.bf16.xpose.msk.msra.mxu1 %vm534_vm3, %v405_v45  ;;  %v174_v51 = vmax.f32 %v155_v47, 0.0 }
  0xf6   :  { %v159_v48 = vpop.f32.mrb[14].mxu0  ;;  %408 = vmatprep.subr.bf16.mxu1 %v442_v2 }
  0xf7   :  { %v160_v49 = vadd.f32 %v300_v16, %v159_v48  ;;  %v368_v50 = vpop.f32.mrb[15].mxu0 }
  0xf9   :  { %v175_v52 = vmax.f32 %v160_v49, 0.0 }
  0xfa   :  { %v164_v53 = vpop.f32.mrb[16].mxu0 }
  0xfb   :  { %v409_v54 = vpack.c.bf16 %v175_v52, %v174_v51  ;;  %v371_v55 = vpop.f32.mrb[17].mxu0  ;;  %v165_v56 = vadd.f32 %v300_v16, %v164_v53 }
  0xfd   :  { %411 = vmatpush3.bf16.xpose.msk.msra.mxu1 %vm534_vm3, %v409_v54  ;;  %v176_v57 = vmax.f32 %v165_v56, 0.0 }
  0xfe   :  { %388 = vmatprep.subr.mxu1 %v444_v4 }
 0x105   :  { %389 = vmatpush3.xpose.msk.msra.mxu1 %vm182_vm2, %v176_v57 }
 0x108   :  { %391 = vmatmul.mubr.msk.f32.vlgmr.msra.gmra.mrb[0].mxu1 %vm182_vm2, %v15_v58 }
 0x1db   :  { %v279_v60 = vpop.f32.mrb[0].mxu1 }
 0x1dc   :  { %v280_v61 = vadd.f32 %v279_v60, %v180_v59  ;;  %v392_v62 = vpop.f32.mrb[1].mxu1 }
 0x1de   :  { %v283_v63 = vmax.f32 %v280_v61, 0.0 }
 0x1e0   :  { %285 = vst.msk [vmem:[#allocation2] sm:$0x1] %vm284_vm4, %v283_v63 }
 0x1e1   :  { %429 = shalt.err (!%p426_p4)
}
 0x1e2   :  { %s430_s13 = scalar_lea.hbm %s569_s2, 16 }
 0x1e3   :  { %p431_p5 = scmp.ne.s32.totalorder %s569_s2, %s430_s13  ;;  %p434_p6 = scmp.lt.u32.totalorder %s430_s13, %s569_s2 }
 0x1e5   :  { %p436_p7 = pnand %p434_p6, %p431_p5 }
 0x1e7   :  { %439 = shalt.err (!%p436_p7)
}
 0x1e8   :  { %295 = dma.vmem_to_hbm [thread:$0]  %s293_s9, 16, %s569_s2, [#allocation3]  }
 0x1e9   :  { %440 = dma.done.wait [#allocation3], 16  }
 0x1ea   :  { %441 = vsyncadd [#allocation3], 4294967280 }
 0x1eb   :  { %299 = vsyncpa [#allocation3], 1 }

</bundles_post_ra>
